<compile_context>
chip_gen: v5e
topology: v5e:2x2
jax: 0.10.0
libtpu: 0.0.40
codegen_flags: <defaults>
</compile_context>

<pallas_src>
import numpy as np
import jax
import jax.numpy as jnp
from jax.experimental import pallas as pl
from jax.experimental.pallas import tpu as pltpu


def _relu_kernel(p_ref, relu_ref):
    # Scalar ReLU on the scalar (SMEM / sreg) path.
    relu_ref[0] = jnp.maximum(p_ref[0], jnp.float32(0.0))


# Gridless call, full-array (1,) refs routed through SMEM.
_relu_penalty = pl.pallas_call(
    _relu_kernel,
    out_shape=jax.ShapeDtypeStruct((1,), jnp.float32),
    in_specs=[pl.BlockSpec(memory_space=pltpu.MemorySpace.SMEM)],
    out_specs=pl.BlockSpec(memory_space=pltpu.MemorySpace.SMEM),
    cost_estimate=pl.CostEstimate(flops=1, transcendentals=0, bytes_accessed=8),
)


def penalty_forward(penalty_param: jax.Array):
    """penalty_param: () float32 learnable scalar.

    Returns (penalty, relu(penalty).detach()) as () scalars, matching the
    PyTorch module's forward(). The first output is differentiable via plain
    JAX (it never enters the kernel); the second is detached, so its input is
    stop_gradient'd *before* the pallas_call — autodiff never traverses the
    custom call.
    """
    pen = penalty_param                                   # differentiable path: zero extra ops
    p_det = jax.lax.stop_gradient(penalty_param)          # .detach() semantics
    p_det = p_det.astype(jnp.float32).reshape((1,))       # (1,) f32 view for the SMEM kernel
    relu_pen = _relu_penalty(p_det)                        # in-kernel scalar ReLU
    relu_pen = jax.lax.stop_gradient(relu_pen[0])          # () detached scalar
    return pen, relu_pen


def init_penalty_param(penalty_init: float = 1.0) -> jax.Array:
    # Matches the PyTorch __init__: log(max(exp(penalty_init) - 1, 1e-8)).
    val = np.log(max(np.exp(penalty_init) - 1.0, 1e-8)).astype(np.float32)
    # Stored as () f32 so the differentiable forward path has no reshapes.
    return jnp.asarray(val, dtype=jnp.float32)


if __name__ == "__main__":
    # Deterministic setup (parameter init is deterministic from penalty_init;
    # PRNGKey used only to satisfy the seeding convention).
    _ = jax.random.PRNGKey(0)

    penalty_param = init_penalty_param(penalty_init=1.0)

    fwd = jax.jit(penalty_forward)
    pen, relu_pen = fwd(penalty_param)
    jax.block_until_ready((pen, relu_pen))

    # Reference check against pure-JAX semantics.
    ref_pen = penalty_param
    ref_relu = jnp.maximum(ref_pen, 0.0)
    assert pen.shape == () and relu_pen.shape == ()
    assert pen.dtype == jnp.float32 and relu_pen.dtype == jnp.float32
    np.testing.assert_allclose(np.asarray(pen), np.asarray(ref_pen), rtol=1e-6)
    np.testing.assert_allclose(np.asarray(relu_pen), np.asarray(ref_relu), rtol=1e-6)

    # Gradient checks: the learnable `penalty` output is differentiable through
    # plain JAX; the detached ReLU output (whose input is stop_gradient'd
    # before the kernel) contributes zero gradient and does not require
    # differentiating through pallas_call.
    g = jax.grad(lambda p: penalty_forward(p)[0])(penalty_param)
    g_detached = jax.grad(lambda p: penalty_forward(p)[1])(penalty_param)
    np.testing.assert_allclose(np.asarray(g), np.asarray(1.0), rtol=1e-6)
    np.testing.assert_allclose(np.asarray(g_detached), np.asarray(0.0), atol=1e-8)

    print("KERNEL_OK")
</pallas_src>

<mosaic_0001>
module attributes {stable_mosaic.version = 11 : i64} {
  func.func @_relu_kernel(%arg0: memref<1xf32, #tpu.memory_space<smem>>, %arg1: memref<1xf32, #tpu.memory_space<smem>>) attributes {dimension_semantics = [], scalar_prefetch = 0 : i64, scratch_operands = 0 : i64, tpu.core_type = #tpu.core_type<tc>} {
    %c0 = arith.constant 0 : index
    %0 = memref.load %arg0[%c0] : memref<1xf32, #tpu.memory_space<smem>>
    %cst = arith.constant 0.000000e+00 : f32
    %1 = arith.maximumf %0, %cst : f32
    %c0_0 = arith.constant 0 : index
    %2 = memref.load %arg1[%c0_0] : memref<1xf32, #tpu.memory_space<smem>>
    memref.store %1, %arg1[%c0_0] : memref<1xf32, #tpu.memory_space<smem>>
    return
  }
}

</mosaic_0001>

<bundles_post_ra>
// kernel: penalty_forward.1
= control target key start
LH: loop header
LB: loop body
LE: loop exit
PB: predicated region body
PF: predicated region fallthrough
CT: control target
= control target key end

     0   :  { %7 = vsyncpa [#allocation4], 0  ;;  %s45_s9 = smov 0.0   ;;  %s46_s13 = smov [#allocation3]   ;;  %s63_s0 = inlined_call_operand.<no memory space> [shape: f32[1], index: 0, kind: input, shape index: {}]   ;;  %s64_s1 = inlined_call_operand.hbm [shape: f32[1], index: 1, kind: output, shape index: {}]  }
   0x1   :  { %s19_s8 = sshll.u32 %s64_s1, 4  ;;  %s11_s12 = smax.f32 %s45_s9, %s63_s0  ;;  %s20_s8 = int_to_ptr.hbm [resolvable:$true] %s19_s8 }
   0x2   :  { %13 = sst [smem:[#allocation3]] %s11_s12 }
   0x3   :  { %22 = dma.smem_to_hbm %s46_s13, 16, %s20_s8, [#allocation4]  }
   0x4   :  { %43 = dma.done.wait [#allocation4], 16  }
   0x5   :  { %44 = vsyncadd [#allocation4], 4294967280 }
   0x6   :  { %27 = sfence }
   0x7   :  { %28 = vsyncpa [#allocation4], 1 }

</bundles_post_ra>
